<compile_context>
chip_gen: v6e
topology: v6e:2x2x1
jax: 0.10.0
libtpu: 0.0.40
codegen_flags: <defaults>
</compile_context>

<pallas_src>
import jax
import jax.numpy as jnp
from jax.experimental import pallas as pl
from jax.experimental.pallas import tpu as pltpu


def _round_up(n, m):
    return ((n + m - 1) // m) * m


def encoder_kernel(x_ref, w1_ref, b1_ref, w2_ref, b2_ref, w3_ref, b3_ref, o_ref):
    x = x_ref[...]  # (TILE_B, 11) -- batch on sublanes, natural HBM layout

    # layer 1: (TB, 11) @ (11, 20) + (1, 20) -> relu
    h1 = jnp.dot(x, w1_ref[...], preferred_element_type=jnp.float32) + b1_ref[...]
    h1 = jnp.maximum(h1, 0.0)

    # layer 2: (TB, 20) @ (20, 8) + (1, 8) -> relu
    h2 = jnp.dot(h1, w2_ref[...], preferred_element_type=jnp.float32) + b2_ref[...]
    h2 = jnp.maximum(h2, 0.0)

    # layer 3: (TB, 8) @ (8, 4) + (1, 4)   (no activation)
    z = jnp.dot(h2, w3_ref[...], preferred_element_type=jnp.float32) + b3_ref[...]
    o_ref[...] = z.astype(o_ref.dtype)


def encoder_forward(x, params, tile_b=512):
    """x: (B, ...) whose trailing dims flatten to 11 features. Returns (B, 4)."""
    B = x.shape[0]
    x_flat = x.reshape(B, -1).astype(jnp.float32)            # torch.flatten(x, 1)
    f_in = x_flat.shape[1]                                    # 11

    w1, b1, w2, b2, w3, b3 = params                           # torch orientation
    d1, d2, d3 = w1.shape[0], w2.shape[0], w3.shape[0]        # 20, 8, 4

    # Kernel-friendly orientations: weights (in, out), biases (1, out). These
    # transposes are tiny one-off XLA ops on a few hundred floats.
    w1t, w2t, w3t = w1.T, w2.T, w3.T
    b1r, b2r, b3r = b1.reshape(1, d1), b2.reshape(1, d2), b3.reshape(1, d3)

    # Sublane-axis batch tiling: pad batch up to a multiple of the 8-aligned tile.
    tile_b = min(tile_b, _round_up(B, 8))
    b_pad = _round_up(B, tile_b)
    if b_pad != B:
        x_flat = jnp.pad(x_flat, ((0, b_pad - B), (0, 0)))

    grid = (b_pad // tile_b,)

    # Resident (constant index_map) specs for weights/biases.
    def const_spec(shape):
        return pl.BlockSpec(shape, lambda i: (0, 0))

    flops = 2 * b_pad * (f_in * d1 + d1 * d2 + d2 * d3)
    bytes_accessed = 4 * (
        b_pad * f_in + b_pad * d3
        + f_in * d1 + d1 + d1 * d2 + d2 + d2 * d3 + d3
    )

    out = pl.pallas_call(
        encoder_kernel,
        out_shape=jax.ShapeDtypeStruct((b_pad, d3), jnp.float32),
        grid=grid,
        in_specs=[
            pl.BlockSpec((tile_b, f_in), lambda i: (i, 0)),   # x tile (contiguous slab)
            const_spec((f_in, d1)),                           # w1^T
            const_spec((1, d1)),                              # b1
            const_spec((d1, d2)),                             # w2^T
            const_spec((1, d2)),                              # b2
            const_spec((d2, d3)),                             # w3^T
            const_spec((1, d3)),                              # b3
        ],
        out_specs=pl.BlockSpec((tile_b, d3), lambda i: (i, 0)),
        compiler_params=pltpu.CompilerParams(
            dimension_semantics=("parallel",),
            vmem_limit_bytes=32 * 1024 * 1024,
        ),
        cost_estimate=pl.CostEstimate(
            flops=flops, transcendentals=0, bytes_accessed=bytes_accessed
        ),
    )(x_flat, w1t, b1r, w2t, b2r, w3t, b3r)

    return out[:B]                                            # (B, 4)


def init_params(key):
    """Deterministic init mimicking nn.Linear: weights (out, in), biases (out,)."""
    def linear(key, fan_in, fan_out):
        kw, kb = jax.random.split(key)
        bound = 1.0 / jnp.sqrt(jnp.float32(fan_in))
        w = jax.random.uniform(kw, (fan_out, fan_in), jnp.float32, -bound, bound)
        b = jax.random.uniform(kb, (fan_out,), jnp.float32, -bound, bound)
        return w, b

    k1, k2, k3 = jax.random.split(key, 3)
    w1, b1 = linear(k1, 11, 20)
    w2, b2 = linear(k2, 20, 8)
    w3, b3 = linear(k3, 8, 4)
    return (w1, b1, w2, b2, w3, b3)


def encoder_ref(x, params):
    """Pure-JAX reference (torch semantics: x @ W.T + b)."""
    w1, b1, w2, b2, w3, b3 = params
    x = x.reshape(x.shape[0], -1).astype(jnp.float32)
    h1 = jnp.maximum(x @ w1.T + b1, 0.0)
    h2 = jnp.maximum(h1 @ w2.T + b2, 0.0)
    return h2 @ w3.T + b3


if __name__ == "__main__":
    key = jax.random.PRNGKey(0)
    kx, kp, kx2 = jax.random.split(key, 3)
    params = init_params(kp)

    # Small batch of 11-feature inputs (flatten(start_dim=1) of (B, 11)).
    x = jax.random.normal(kx, (8, 11), jnp.float32)
    z = encoder_forward(x, params)
    jax.block_until_ready(z)
    z_ref = encoder_ref(x, params)
    assert z.shape == (8, 4)
    assert jnp.allclose(z, z_ref, atol=1e-5, rtol=1e-5)

    # Exercise the padded, multi-tile pipelined path (B not a multiple of tile).
    x2 = jax.random.normal(kx2, (300, 11), jnp.float32)
    z2 = encoder_forward(x2, params, tile_b=128)   # grid = (3,), padded to 384
    jax.block_until_ready(z2)
    z2_ref = encoder_ref(x2, params)
    assert z2.shape == (300, 4)
    assert jnp.allclose(z2, z2_ref, atol=1e-5, rtol=1e-5)

    print("KERNEL_OK")
</pallas_src>

<mosaic_0001>
module attributes {stable_mosaic.version = 11 : i64} {
  func.func @encoder_kernel(%arg0: i32, %arg1: memref<8x11xf32, #tpu.memory_space<vmem>>, %arg2: memref<11x20xf32, #tpu.memory_space<vmem>>, %arg3: memref<1x20xf32, #tpu.memory_space<vmem>>, %arg4: memref<20x8xf32, #tpu.memory_space<vmem>>, %arg5: memref<1x8xf32, #tpu.memory_space<vmem>>, %arg6: memref<8x4xf32, #tpu.memory_space<vmem>>, %arg7: memref<1x4xf32, #tpu.memory_space<vmem>>, %arg8: memref<8x4xf32, #tpu.memory_space<vmem>>) attributes {dimension_semantics = [#tpu.dimension_semantics<parallel>], iteration_bounds = array<i64: 1>, scalar_prefetch = 0 : i64, scratch_operands = 0 : i64, tpu.core_type = #tpu.core_type<tc>, window_params = [{transform_indices = @transform_0, window_bounds = array<i64: 8, 11>}, {pipeline_mode = #tpu.pipeline_mode<synchronous>, transform_indices = @transform_1, window_bounds = array<i64: 11, 20>}, {pipeline_mode = #tpu.pipeline_mode<synchronous>, transform_indices = @transform_2, window_bounds = array<i64: 1, 20>}, {pipeline_mode = #tpu.pipeline_mode<synchronous>, transform_indices = @transform_3, window_bounds = array<i64: 20, 8>}, {pipeline_mode = #tpu.pipeline_mode<synchronous>, transform_indices = @transform_4, window_bounds = array<i64: 1, 8>}, {pipeline_mode = #tpu.pipeline_mode<synchronous>, transform_indices = @transform_5, window_bounds = array<i64: 8, 4>}, {pipeline_mode = #tpu.pipeline_mode<synchronous>, transform_indices = @transform_6, window_bounds = array<i64: 1, 4>}, {transform_indices = @transform_7, window_bounds = array<i64: 8, 4>}]} {
    %c0 = arith.constant 0 : index
    %c0_0 = arith.constant 0 : index
    %0 = vector.load %arg1[%c0, %c0_0] : memref<8x11xf32, #tpu.memory_space<vmem>>, vector<8x11xf32>
    %c0_1 = arith.constant 0 : index
    %c0_2 = arith.constant 0 : index
    %1 = vector.load %arg2[%c0_1, %c0_2] : memref<11x20xf32, #tpu.memory_space<vmem>>, vector<11x20xf32>
    %cst = arith.constant dense<0.000000e+00> : vector<8x20xf32>
    %2 = tpu.matmul %0, %1, %cst {dimension_numbers = #tpu.dot_dimension_numbers<[1], [0], [0], [1], [0, 0, 1, 1], [], []>} : vector<8x11xf32>, vector<11x20xf32>, vector<8x20xf32> -> vector<8x20xf32>
    %c0_3 = arith.constant 0 : index
    %c0_4 = arith.constant 0 : index
    %3 = vector.load %arg3[%c0_3, %c0_4] : memref<1x20xf32, #tpu.memory_space<vmem>>, vector<1x20xf32>
    %4 = vector.broadcast %3 : vector<1x20xf32> to vector<8x20xf32>
    %5 = arith.addf %2, %4 : vector<8x20xf32>
    %cst_5 = arith.constant 0.000000e+00 : f32
    %6 = vector.broadcast %cst_5 : f32 to vector<8x20xf32>
    %7 = arith.maximumf %5, %6 : vector<8x20xf32>
    %c0_6 = arith.constant 0 : index
    %c0_7 = arith.constant 0 : index
    %8 = vector.load %arg4[%c0_6, %c0_7] : memref<20x8xf32, #tpu.memory_space<vmem>>, vector<20x8xf32>
    %cst_8 = arith.constant dense<0.000000e+00> : vector<8x8xf32>
    %9 = tpu.matmul %7, %8, %cst_8 {dimension_numbers = #tpu.dot_dimension_numbers<[1], [0], [0], [1], [0, 0, 1, 1], [], []>} : vector<8x20xf32>, vector<20x8xf32>, vector<8x8xf32> -> vector<8x8xf32>
    %c0_9 = arith.constant 0 : index
    %c0_10 = arith.constant 0 : index
    %10 = vector.load %arg5[%c0_9, %c0_10] : memref<1x8xf32, #tpu.memory_space<vmem>>, vector<1x8xf32>
    %11 = vector.broadcast %10 : vector<1x8xf32> to vector<8x8xf32>
    %12 = arith.addf %9, %11 : vector<8x8xf32>
    %cst_11 = arith.constant 0.000000e+00 : f32
    %13 = vector.broadcast %cst_11 : f32 to vector<8x8xf32>
    %14 = arith.maximumf %12, %13 : vector<8x8xf32>
    %c0_12 = arith.constant 0 : index
    %c0_13 = arith.constant 0 : index
    %15 = vector.load %arg6[%c0_12, %c0_13] : memref<8x4xf32, #tpu.memory_space<vmem>>, vector<8x4xf32>
    %cst_14 = arith.constant dense<0.000000e+00> : vector<8x4xf32>
    %16 = tpu.matmul %14, %15, %cst_14 {dimension_numbers = #tpu.dot_dimension_numbers<[1], [0], [0], [1], [0, 0, 1, 1], [], []>} : vector<8x8xf32>, vector<8x4xf32>, vector<8x4xf32> -> vector<8x4xf32>
    %c0_15 = arith.constant 0 : index
    %c0_16 = arith.constant 0 : index
    %17 = vector.load %arg7[%c0_15, %c0_16] : memref<1x4xf32, #tpu.memory_space<vmem>>, vector<1x4xf32>
    %18 = vector.broadcast %17 : vector<1x4xf32> to vector<8x4xf32>
    %19 = arith.addf %16, %18 : vector<8x4xf32>
    %c0_17 = arith.constant 0 : index
    %c0_18 = arith.constant 0 : index
    %20 = vector.load %arg8[%c0_17, %c0_18] : memref<8x4xf32, #tpu.memory_space<vmem>>, vector<8x4xf32>
    tpu.vector_store %arg8[%c0_17, %c0_18], %19 {strides = array<i32>} : memref<8x4xf32, #tpu.memory_space<vmem>>, vector<8x4xf32>,
    return
  }
  func.func @transform_0(%arg0: i32) -> (i32, i32) {
    %c0_i32 = arith.constant 0 : i32
    %c0_i32_0 = arith.constant 0 : i32
    return %arg0, %c0_i32 : i32, i32
  }
  func.func @transform_1(%arg0: i32) -> (i32, i32) {
    %c0_i32 = arith.constant 0 : i32
    %c0_i32_0 = arith.constant 0 : i32
    %c0_i32_1 = arith.constant 0 : i32
    return %c0_i32, %c0_i32_0 : i32, i32
  }
  func.func @transform_2(%arg0: i32) -> (i32, i32) {
    %c0_i32 = arith.constant 0 : i32
    %c0_i32_0 = arith.constant 0 : i32
    %c0_i32_1 = arith.constant 0 : i32
    return %c0_i32, %c0_i32_0 : i32, i32
  }
  func.func @transform_3(%arg0: i32) -> (i32, i32) {
    %c0_i32 = arith.constant 0 : i32
    %c0_i32_0 = arith.constant 0 : i32
    %c0_i32_1 = arith.constant 0 : i32
    return %c0_i32, %c0_i32_0 : i32, i32
  }
  func.func @transform_4(%arg0: i32) -> (i32, i32) {
    %c0_i32 = arith.constant 0 : i32
    %c0_i32_0 = arith.constant 0 : i32
    %c0_i32_1 = arith.constant 0 : i32
    return %c0_i32, %c0_i32_0 : i32, i32
  }
  func.func @transform_5(%arg0: i32) -> (i32, i32) {
    %c0_i32 = arith.constant 0 : i32
    %c0_i32_0 = arith.constant 0 : i32
    %c0_i32_1 = arith.constant 0 : i32
    return %c0_i32, %c0_i32_0 : i32, i32
  }
  func.func @transform_6(%arg0: i32) -> (i32, i32) {
    %c0_i32 = arith.constant 0 : i32
    %c0_i32_0 = arith.constant 0 : i32
    %c0_i32_1 = arith.constant 0 : i32
    return %c0_i32, %c0_i32_0 : i32, i32
  }
  func.func @transform_7(%arg0: i32) -> (i32, i32) {
    %c0_i32 = arith.constant 0 : i32
    %c0_i32_0 = arith.constant 0 : i32
    return %arg0, %c0_i32 : i32, i32
  }
}

</mosaic_0001>

<bundles_post_ra>
// kernel: tpu_custom_call.1
= control target key start
LH: loop header
LB: loop body
LE: loop exit
PB: predicated region body
PF: predicated region fallthrough
CT: control target
= control target key end

     0   :  { %vm40_vm0 = vcmask 1042432   ;;  %v332_v0 = vmov 0.0   ;;  %vm333_vm1 = vmmov 0   ;;  %vm36_vm2 = vcmask 89088   ;;  %s407_s1 = inlined_call_operand.vmem [shape: f32[11,20], index: 1, kind: input, shape index: {}]   ;;  %s408_s0 = inlined_call_operand.vmem [shape: f32[8,11], index: 0, kind: input, shape index: {}]   ;;  %s409_s3 = inlined_call_operand.vmem [shape: f32[20,8], index: 3, kind: input, shape index: {}]   ;;  %s410_s2 = inlined_call_operand.vmem [shape: f32[1,20], index: 2, kind: input, shape index: {}]   ;;  %s411_s5 = inlined_call_operand.vmem [shape: f32[8,4], index: 5, kind: input, shape index: {}]   ;;  %s412_s4 = inlined_call_operand.vmem [shape: f32[1,8], index: 4, kind: input, shape index: {}]   ;;  %s413_s6 = inlined_call_operand.vmem [shape: f32[1,4], index: 6, kind: input, shape index: {}]   ;;  %s414_s7 = inlined_call_operand.vmem [shape: f32[8,4], index: 7, kind: output, shape index: {}]  }
   0x1   :  { %309 = vmatprep.subr.mxu0 %v332_v0  ;;  %v28_v1 = vld [vmem:[%s407_s1 + $0x8] sm:$0x7]  ;;  %v27_v2 = vld [vmem:[%s407_s1] sm:$0xff]  ;;  %313 = vmatprep.mubr.msk.f32.mxu0 %vm333_vm1, %v332_v0  ;;  %v117_v4 = vld [vmem:[%s409_s3 + $0x10] sm:$0xf]  ;;  %vm129_vm3 = vcmask 1043456  }
   0x2   :  { %310 = vmatpush3.msk.msra.mxu0 %vm40_vm0, %v28_v1  ;;  %v26_v3 = vld [vmem:[%s408_s0] sm:$0xff]  ;;  %316 = vmatprep.subr.mxu1 %v332_v0  ;;  %v116_v5 = vld [vmem:[%s409_s3 + $0x8] sm:$0xff]  ;;  %vm125_vm4 = vcmask 162816   ;;  %vm212_vm5 = vcmask 64512   ;;  %vm286_vm6 = vcmask 31744  }
   0x3   :  { %311 = vmatprep.subr.mxu0 %v332_v0  ;;  %322 = vmatprep.mubr.msk.f32.mxu1 %vm333_vm1, %v332_v0  ;;  %v115_v6 = vld [vmem:[%s409_s3] sm:$0xff] }
   0x4   :  { %312 = vmatpush3.msra.mxu0 %v27_v2  ;;  %317 = vmatpush3.msk.msra.mxu1 %vm129_vm3, %v117_v4  ;;  %v292_v7 = vld [vmem:[%s410_s2] ss:$0 sm:$0xff] }
   0x5   :  { %314 = vmatmul.mubr.msk.f32.vlgmr.msra.gmra.mxu0 %vm36_vm2, %v26_v3  ;;  %325 = vmatprep.subr.mxu0 %v332_v0  ;;  %v204_v12 = vld [vmem:[%s411_s5] sm:$0xff] }
   0x6   :  { %327 = vmatprep.mubr.msk.f32.mxu0 %vm333_vm1, %v332_v0  ;;  %318 = vmatprep.subr.mxu1 %v332_v0  ;;  %v295_v13 = vld [vmem:[%s412_s4] ss:$0 sm:$0xff] }
   0x7   :  { %319 = vmatpush3.msra.mxu1 %v116_v5  ;;  %326 = vmatpush3.msra.mxu0 %v204_v12  ;;  %v298_v18 = vld [vmem:[%s413_s6] ss:$0 sm:$0xff] }
   0x8   :  { %320 = vmatprep.subr.mxu1 %v332_v0 }
   0x9   :  { %321 = vmatpush3.msra.mxu1 %v115_v6 }
  0xc5   :  { %v110_v8 = vpop.f32.mrf.mxu0 }
  0xc6   :  { %v111_v9 = vadd.f32 %v292_v7, %v110_v8 }
  0xc7   :  { %v315_v10 = vpop.f32.mrf.mxu0 }
  0xc8   :  { %v114_v11 = vmax.f32 %v111_v9, 0.0 }
  0xca   :  { %323 = vmatmul.mubr.msk.f32.vlgmr.msra.gmra.mxu1 %vm125_vm4, %v114_v11 }
 0x18a   :  { %v199_v14 = vpop.f32.mrf.mxu1 }
 0x18b   :  { %v200_v15 = vadd.f32 %v295_v13, %v199_v14 }
 0x18c   :  { %v324_v16 = vpop.f32.mrf.mxu1 }
 0x18d   :  { %v203_v17 = vmax.f32 %v200_v15, 0.0 }
 0x18f   :  { %328 = vmatmul.mubr.msk.f32.vlgmr.msra.gmra.mxu0 %vm212_vm5, %v203_v17 }
 0x24f   :  { %v282_v19 = vpop.f32.mrf.mxu0 }
 0x250   :  { %v283_v20 = vadd.f32 %v298_v18, %v282_v19 }
 0x251   :  { %v329_v21 = vpop.f32.mrf.mxu0 }
 0x252   :  { %287 = vst.msk [vmem:[%s414_s7] sm:$0xff] %vm286_vm6, %v283_v20 }

</bundles_post_ra>
